<compile_context>
chip_gen: v7x
topology: tpu7x:2x2x1
jax: 0.10.0
libtpu: 0.0.40
codegen_flags: <defaults>
</compile_context>

<pallas_src>
import functools

import jax
import jax.numpy as jnp
from jax import lax
from jax.experimental import pallas as pl
from jax.experimental.pallas import tpu as pltpu

EPS = 1e-5
HPAD = 128  # lane-dense padded width for every hidden layer and the output


# ---------------------------------------------------------------------------
# Kernel: fc1->relu -> fc2->relu -> fc5->relu -> fc6 on BN-folded weights
# ---------------------------------------------------------------------------
def qnetwork_kernel(x_ref, w1_ref, wpack_ref, b_ref, o_ref):
    b = b_ref[...]                       # (4, HPAD) f32 packed biases
    cd = w1_ref.dtype                    # bf16 (default) or f32 compute dtype

    def dense(h, w, row, relu):
        y = jnp.dot(h.astype(cd), w, preferred_element_type=jnp.float32) + b[row, :]
        return jnp.maximum(y, 0.0) if relu else y

    h = dense(x_ref[...], w1_ref[...], 0, True)      # fc1 -> relu1 (bn1 folded into fc2)
    h = dense(h, wpack_ref[0], 1, True)              # fc2 -> relu2 (bn2 folded into fc5)
    h = dense(h, wpack_ref[1], 2, True)              # fc5 -> relu5 (bn5 folded into fc6)
    out = dense(h, wpack_ref[2], 3, False)           # fc6 (Q-values; no softmax in forward)
    # TODO(synk): training-mode Dropout(p=0.5) would use pltpu.prng_random_bits;
    # inference forward is the identity, which is what is implemented.
    o_ref[...] = out.astype(o_ref.dtype)


# ---------------------------------------------------------------------------
# Wrapper: BN folding, lane padding, packing, chip-aware batch tiling
# ---------------------------------------------------------------------------
def _round_up(n, m):
    return ((n + m - 1) // m) * m


def _tensorcores_per_chip():
    """Best-effort TensorCores-per-jax-device (megacore gating). Defaults to 1."""
    try:
        kind = jax.devices()[0].device_kind.lower()
    except Exception:
        return 1
    if "lite" in kind or "v5e" in kind or "v6e" in kind:
        return 1                                     # v5e / v6e: 1 TC per chip
    if "v4" in kind or "v5p" in kind or kind.strip().endswith("v5") or "7" in kind:
        return 2                                     # v4 / v5p megacore, v7x: 2 TCs
    return 1


def _fold_bn_into_next(w_next, b_next, g, be, m, v):
    """Absorb eval-mode BatchNorm1d (applied before w_next) into w_next/b_next."""
    a = g * lax.rsqrt(v + EPS)          # (1, d_in)
    c = be - a * m                      # (1, d_in)
    return a.reshape(-1, 1) * w_next, c @ w_next + b_next


def _pad2(w, rows, cols):
    return jnp.pad(w, ((0, rows - w.shape[0]), (0, cols - w.shape[1])))


def _prepare_params(p, param_dtype):
    """Fold BNs into the following linears (in f32), pad to 128 lanes, pack."""
    w1, b1 = p["w1"], p["b1"]
    w2, b2 = _fold_bn_into_next(p["w2"], p["b2"], p["g1"], p["be1"], p["m1"], p["v1"])
    w5, b5 = _fold_bn_into_next(p["w5"], p["b5"], p["g2"], p["be2"], p["m2"], p["v2"])
    w6, b6 = _fold_bn_into_next(p["w6"], p["b6"], p["g5"], p["be5"], p["m5"], p["v5"])

    S = w1.shape[0]
    w1p = _pad2(w1, S, HPAD).astype(param_dtype)
    # Pack the three 128x128 weights into a single operand (one DMA, not three).
    wpack = jnp.stack(
        [_pad2(w2, HPAD, HPAD), _pad2(w5, HPAD, HPAD), _pad2(w6, HPAD, HPAD)], axis=0
    ).astype(param_dtype)                            # (3, HPAD, HPAD)
    bias = jnp.concatenate(
        [_pad2(b, 1, HPAD) for b in (b1, b2, b5, b6)], axis=0
    ).astype(jnp.float32)                            # bias / relu math stays f32
    return w1p, wpack, bias


@functools.partial(jax.jit, static_argnames=("tile_b", "use_bf16", "num_tensorcores"))
def qnetwork_forward(x, params, tile_b=1024, use_bf16=True, num_tensorcores=None):
    B, S = x.shape
    A = params["w6"].shape[1]
    param_dtype = jnp.bfloat16 if use_bf16 else jnp.float32
    w1p, wpack, bias = _prepare_params(params, param_dtype)

    # Pre-cast activations to the compute dtype (halves the input DMA in bf16).
    x = x.astype(param_dtype)

    # --- chip-aware batch tiling -----------------------------------------
    ntc = num_tensorcores if num_tensorcores is not None else _tensorcores_per_chip()
    nsteps = pl.cdiv(B, tile_b)
    if ntc > 1:
        # Megacore (v7x): >= 2 and an even number of grid steps so both
        # TensorCores get balanced work under dimension_semantics=("parallel",).
        nsteps = max(2, 2 * ((nsteps + 1) // 2))
    # Single-TC chips (v5e/v6e): the grid is a sequential loop, so never force
    # extra steps -- B <= tile_b runs as one grid step.
    tb = max(8, _round_up(pl.cdiv(B, nsteps), 8))    # sublane-aligned batch tile
    Bp = nsteps * tb
    if Bp != B:
        x = jnp.pad(x, ((0, Bp - B), (0, 0)))        # zero rows, sliced off below

    in_specs = [
        pl.BlockSpec((tb, S), lambda i: (i, 0)),           # x tile
        pl.BlockSpec((S, HPAD), lambda i: (0, 0)),          # fc1 weight
        pl.BlockSpec((3, HPAD, HPAD), lambda i: (0, 0, 0)), # packed fc2/fc5/fc6 (BN folded)
        pl.BlockSpec((4, HPAD), lambda i: (0, 0)),          # packed biases (f32)
    ]

    wbytes = 2 if use_bf16 else 4
    cost = pl.CostEstimate(
        flops=2 * Bp * (S * HPAD + 3 * HPAD * HPAD),
        transcendentals=0,
        bytes_accessed=Bp * S * wbytes                 # x (compute dtype)
        + Bp * HPAD * 4                                # output (f32)
        + (S * HPAD + 3 * HPAD * HPAD) * wbytes        # weights
        + 4 * HPAD * 4,                                # biases
    )

    out_padded = pl.pallas_call(
        qnetwork_kernel,
        out_shape=jax.ShapeDtypeStruct((Bp, HPAD), jnp.float32),
        grid_spec=pltpu.PrefetchScalarGridSpec(
            num_scalar_prefetch=0,
            grid=(nsteps,),
            in_specs=in_specs,
            out_specs=pl.BlockSpec((tb, HPAD), lambda i: (i, 0)),
        ),
        compiler_params=pltpu.CompilerParams(
            dimension_semantics=("parallel",),
        ),
        cost_estimate=cost,
    )(x, w1p, wpack, bias)

    return out_padded[:B, :A]


# ---------------------------------------------------------------------------
# Params / reference
# ---------------------------------------------------------------------------
def init_params(key, state_size, action_size, random_bn=False):
    """PyTorch nn.Linear-style init; BN stats randomized (as if trained) so the
    BN folding is actually exercised."""
    def linear(k, din, dout):
        k1, k2 = jax.random.split(k)
        bound = 1.0 / jnp.sqrt(din)
        w = jax.random.uniform(k1, (din, dout), jnp.float32, -bound, bound)
        b = jax.random.uniform(k2, (1, dout), jnp.float32, -bound, bound)
        return w, b

    def bn(k, d):
        if random_bn:
            kg, kb, km, kv = jax.random.split(k, 4)
            return (jax.random.uniform(kg, (1, d), jnp.float32, 0.5, 1.5),   # gamma
                    jax.random.uniform(kb, (1, d), jnp.float32, -0.2, 0.2),  # beta
                    jax.random.uniform(km, (1, d), jnp.float32, -0.5, 0.5),  # mean
                    jax.random.uniform(kv, (1, d), jnp.float32, 0.5, 2.0))   # var
        return (jnp.ones((1, d), jnp.float32), jnp.zeros((1, d), jnp.float32),
                jnp.zeros((1, d), jnp.float32), jnp.ones((1, d), jnp.float32))

    k1, k2, k5, k6, kb1, kb2, kb5 = jax.random.split(key, 7)
    p = {}
    p["w1"], p["b1"] = linear(k1, state_size, 64)
    p["g1"], p["be1"], p["m1"], p["v1"] = bn(kb1, 64)
    p["w2"], p["b2"] = linear(k2, 64, 128)
    p["g2"], p["be2"], p["m2"], p["v2"] = bn(kb2, 128)
    p["w5"], p["b5"] = linear(k5, 128, 64)
    p["g5"], p["be5"], p["m5"], p["v5"] = bn(kb5, 64)
    p["w6"], p["b6"] = linear(k6, 64, action_size)
    return p


def reference_forward(x, p):
    """Plain-JAX reference (un-folded BN, eval mode) for correctness checking."""
    def bn(h, g, be, m, v):
        return g * (h - m) / jnp.sqrt(v + EPS) + be
    h = jnp.maximum(x @ p["w1"] + p["b1"], 0.0)
    h = bn(h, p["g1"], p["be1"], p["m1"], p["v1"])
    h = jnp.maximum(h @ p["w2"] + p["b2"], 0.0)
    h = bn(h, p["g2"], p["be2"], p["m2"], p["v2"])
    h = jnp.maximum(h @ p["w5"] + p["b5"], 0.0)
    h = bn(h, p["g5"], p["be5"], p["m5"], p["v5"])
    return h @ p["w6"] + p["b6"]


if __name__ == "__main__":
    key = jax.random.PRNGKey(0)
    k_param, k_x = jax.random.split(key)

    batch, state_size, action_size = 256, 16, 4
    params = init_params(k_param, state_size, action_size, random_bn=True)
    x = jax.random.normal(k_x, (batch, state_size), jnp.float32)

    ref = reference_forward(x, params)

    # Default path (bf16 weights/activations, f32 accumulation). Note: bf16
    # Q-values may flip argmax between nearly-tied actions; use use_bf16=False
    # where exact parity with the f32 PyTorch module is required.
    out = jax.block_until_ready(qnetwork_forward(x, params))
    assert out.shape == (batch, action_size)
    assert jnp.allclose(out, ref, atol=5e-2, rtol=5e-2), "bf16 mismatch vs reference"

    # Exact f32 path: BN folding + lane padding must reproduce the reference.
    out_f32 = jax.block_until_ready(qnetwork_forward(x, params, use_bf16=False))
    assert jnp.allclose(out_f32, ref, atol=1e-4, rtol=1e-4), "f32 mismatch vs reference"

    # Ragged batch handled via zero-padding + slice.
    out_ragged = jax.block_until_ready(qnetwork_forward(x[:37], params, use_bf16=False))
    assert out_ragged.shape == (37, action_size)
    assert jnp.allclose(out_ragged, ref[:37], atol=1e-4, rtol=1e-4), "ragged mismatch"

    # Force the megacore (v7x-style) path: even >=2 grid steps, same numerics.
    out_mc = jax.block_until_ready(
        qnetwork_forward(x, params, use_bf16=False, num_tensorcores=2))
    assert jnp.allclose(out_mc, ref, atol=1e-4, rtol=1e-4), "megacore-path mismatch"

    print("KERNEL_OK")
</pallas_src>

<mosaic_0001>
module attributes {stable_mosaic.version = 11 : i64} {
  func.func @qnetwork_kernel(%arg0: i32, %arg1: memref<256x16xbf16, #tpu.memory_space<vmem>>, %arg2: memref<16x128xbf16, #tpu.memory_space<vmem>>, %arg3: memref<3x128x128xbf16, #tpu.memory_space<vmem>>, %arg4: memref<4x128xf32, #tpu.memory_space<vmem>>, %arg5: memref<256x128xf32, #tpu.memory_space<vmem>>) attributes {dimension_semantics = [#tpu.dimension_semantics<parallel>], iteration_bounds = array<i64: 1>, scalar_prefetch = 0 : i64, scratch_operands = 0 : i64, tpu.core_type = #tpu.core_type<tc>, window_params = [{transform_indices = @transform_0, window_bounds = array<i64: 256, 16>}, {pipeline_mode = #tpu.pipeline_mode<synchronous>, transform_indices = @transform_1, window_bounds = array<i64: 16, 128>}, {pipeline_mode = #tpu.pipeline_mode<synchronous>, transform_indices = @transform_2, window_bounds = array<i64: 3, 128, 128>}, {pipeline_mode = #tpu.pipeline_mode<synchronous>, transform_indices = @transform_3, window_bounds = array<i64: 4, 128>}, {transform_indices = @transform_4, window_bounds = array<i64: 256, 128>}]} {
    %c0 = arith.constant 0 : index
    %c0_0 = arith.constant 0 : index
    %0 = vector.load %arg4[%c0, %c0_0] : memref<4x128xf32, #tpu.memory_space<vmem>>, vector<4x128xf32>
    %c0_1 = arith.constant 0 : index
    %c0_2 = arith.constant 0 : index
    %1 = vector.load %arg1[%c0_1, %c0_2] : memref<256x16xbf16, #tpu.memory_space<vmem>>, vector<256x16xbf16>
    %c0_3 = arith.constant 0 : index
    %c0_4 = arith.constant 0 : index
    %2 = vector.load %arg2[%c0_3, %c0_4] : memref<16x128xbf16, #tpu.memory_space<vmem>>, vector<16x128xbf16>
    %cst = arith.constant dense<0.000000e+00> : vector<256x128xf32>
    %3 = tpu.matmul %1, %2, %cst {dimension_numbers = #tpu.dot_dimension_numbers<[1], [0], [0], [1], [0, 0, 1, 1], [], []>} : vector<256x16xbf16>, vector<16x128xbf16>, vector<256x128xf32> -> vector<256x128xf32>
    %4 = vector.extract_strided_slice %0 {offsets = [0, 0], sizes = [1, 128], strides = [1, 1]} : vector<4x128xf32> to vector<1x128xf32>
    %5 = vector.shape_cast %4 : vector<1x128xf32> to vector<128xf32>
    %6 = vector.shape_cast %5 : vector<128xf32> to vector<1x128xf32>
    %7 = vector.broadcast %6 : vector<1x128xf32> to vector<256x128xf32>
    %8 = arith.addf %3, %7 : vector<256x128xf32>
    %cst_5 = arith.constant 0.000000e+00 : f32
    %9 = vector.broadcast %cst_5 : f32 to vector<256x128xf32>
    %10 = arith.maximumf %8, %9 : vector<256x128xf32>
    %c0_6 = arith.constant 0 : index
    %c0_7 = arith.constant 0 : index
    %c0_8 = arith.constant 0 : index
    %11 = vector.load %arg3[%c0_6, %c0_7, %c0_8] : memref<3x128x128xbf16, #tpu.memory_space<vmem>>, vector<1x128x128xbf16>
    %12 = vector.shape_cast %11 : vector<1x128x128xbf16> to vector<128x128xbf16>
    %13 = arith.truncf %10 : vector<256x128xf32> to vector<256x128xbf16>
    %cst_9 = arith.constant dense<0.000000e+00> : vector<256x128xf32>
    %14 = tpu.matmul %13, %12, %cst_9 {dimension_numbers = #tpu.dot_dimension_numbers<[1], [0], [0], [1], [0, 0, 1, 1], [], []>} : vector<256x128xbf16>, vector<128x128xbf16>, vector<256x128xf32> -> vector<256x128xf32>
    %15 = vector.extract_strided_slice %0 {offsets = [1, 0], sizes = [1, 128], strides = [1, 1]} : vector<4x128xf32> to vector<1x128xf32>
    %16 = vector.shape_cast %15 : vector<1x128xf32> to vector<128xf32>
    %17 = vector.shape_cast %16 : vector<128xf32> to vector<1x128xf32>
    %18 = vector.broadcast %17 : vector<1x128xf32> to vector<256x128xf32>
    %19 = arith.addf %14, %18 : vector<256x128xf32>
    %cst_10 = arith.constant 0.000000e+00 : f32
    %20 = vector.broadcast %cst_10 : f32 to vector<256x128xf32>
    %21 = arith.maximumf %19, %20 : vector<256x128xf32>
    %c1 = arith.constant 1 : index
    %c0_11 = arith.constant 0 : index
    %c0_12 = arith.constant 0 : index
    %22 = vector.load %arg3[%c1, %c0_11, %c0_12] : memref<3x128x128xbf16, #tpu.memory_space<vmem>>, vector<1x128x128xbf16>
    %23 = vector.shape_cast %22 : vector<1x128x128xbf16> to vector<128x128xbf16>
    %24 = arith.truncf %21 : vector<256x128xf32> to vector<256x128xbf16>
    %cst_13 = arith.constant dense<0.000000e+00> : vector<256x128xf32>
    %25 = tpu.matmul %24, %23, %cst_13 {dimension_numbers = #tpu.dot_dimension_numbers<[1], [0], [0], [1], [0, 0, 1, 1], [], []>} : vector<256x128xbf16>, vector<128x128xbf16>, vector<256x128xf32> -> vector<256x128xf32>
    %26 = vector.extract_strided_slice %0 {offsets = [2, 0], sizes = [1, 128], strides = [1, 1]} : vector<4x128xf32> to vector<1x128xf32>
    %27 = vector.shape_cast %26 : vector<1x128xf32> to vector<128xf32>
    %28 = vector.shape_cast %27 : vector<128xf32> to vector<1x128xf32>
    %29 = vector.broadcast %28 : vector<1x128xf32> to vector<256x128xf32>
    %30 = arith.addf %25, %29 : vector<256x128xf32>
    %cst_14 = arith.constant 0.000000e+00 : f32
    %31 = vector.broadcast %cst_14 : f32 to vector<256x128xf32>
    %32 = arith.maximumf %30, %31 : vector<256x128xf32>
    %c2 = arith.constant 2 : index
    %c0_15 = arith.constant 0 : index
    %c0_16 = arith.constant 0 : index
    %33 = vector.load %arg3[%c2, %c0_15, %c0_16] : memref<3x128x128xbf16, #tpu.memory_space<vmem>>, vector<1x128x128xbf16>
    %34 = vector.shape_cast %33 : vector<1x128x128xbf16> to vector<128x128xbf16>
    %35 = arith.truncf %32 : vector<256x128xf32> to vector<256x128xbf16>
    %cst_17 = arith.constant dense<0.000000e+00> : vector<256x128xf32>
    %36 = tpu.matmul %35, %34, %cst_17 {dimension_numbers = #tpu.dot_dimension_numbers<[1], [0], [0], [1], [0, 0, 1, 1], [], []>} : vector<256x128xbf16>, vector<128x128xbf16>, vector<256x128xf32> -> vector<256x128xf32>
    %37 = vector.extract_strided_slice %0 {offsets = [3, 0], sizes = [1, 128], strides = [1, 1]} : vector<4x128xf32> to vector<1x128xf32>
    %38 = vector.shape_cast %37 : vector<1x128xf32> to vector<128xf32>
    %39 = vector.shape_cast %38 : vector<128xf32> to vector<1x128xf32>
    %40 = vector.broadcast %39 : vector<1x128xf32> to vector<256x128xf32>
    %41 = arith.addf %36, %40 : vector<256x128xf32>
    %c0_18 = arith.constant 0 : index
    %c0_19 = arith.constant 0 : index
    %42 = vector.load %arg5[%c0_18, %c0_19] : memref<256x128xf32, #tpu.memory_space<vmem>>, vector<256x128xf32>
    tpu.vector_store %arg5[%c0_18, %c0_19], %41 {strides = array<i32>} : memref<256x128xf32, #tpu.memory_space<vmem>>, vector<256x128xf32>,
    return
  }
  func.func @transform_0(%arg0: i32) -> (i32, i32) {
    %c0_i32 = arith.constant 0 : i32
    %c0_i32_0 = arith.constant 0 : i32
    return %arg0, %c0_i32 : i32, i32
  }
  func.func @transform_1(%arg0: i32) -> (i32, i32) {
    %c0_i32 = arith.constant 0 : i32
    %c0_i32_0 = arith.constant 0 : i32
    %c0_i32_1 = arith.constant 0 : i32
    return %c0_i32, %c0_i32_0 : i32, i32
  }
  func.func @transform_2(%arg0: i32) -> (i32, i32, i32) {
    %c0_i32 = arith.constant 0 : i32
    %c0_i32_0 = arith.constant 0 : i32
    %c0_i32_1 = arith.constant 0 : i32
    %c0_i32_2 = arith.constant 0 : i32
    return %c0_i32, %c0_i32_0, %c0_i32_1 : i32, i32, i32
  }
  func.func @transform_3(%arg0: i32) -> (i32, i32) {
    %c0_i32 = arith.constant 0 : i32
    %c0_i32_0 = arith.constant 0 : i32
    %c0_i32_1 = arith.constant 0 : i32
    return %c0_i32, %c0_i32_0 : i32, i32
  }
  func.func @transform_4(%arg0: i32) -> (i32, i32) {
    %c0_i32 = arith.constant 0 : i32
    %c0_i32_0 = arith.constant 0 : i32
    return %arg0, %c0_i32 : i32, i32
  }
}

</mosaic_0001>

<bundles_post_ra>
// kernel: qnetwork_forward.1
= control target key start
LH: loop header
LB: loop body
LE: loop exit
PB: predicated region body
PF: predicated region fallthrough
CT: control target
= control target key end

     0   :  { %vm143_vm0 = vcmask 130048   ;;  %v53_v32 = vlaneseq  ;;  %s2064_s1 = inlined_call_operand.vmem [shape: bf16[16,128], index: 1, kind: input, shape index: {}]   ;;  %s2065_s0 = inlined_call_operand.vmem [shape: bf16[256,16], index: 0, kind: input, shape index: {}]   ;;  %s2066_s2 = inlined_call_operand.vmem [shape: bf16[3,128,128], index: 2, kind: input, shape index: {}]   ;;  %s2067_s3 = inlined_call_operand.vmem [shape: f32[4,128], index: 3, kind: input, shape index: {}]   ;;  %s2068_s4 = inlined_call_operand.vmem [shape: f32[256,128], index: 4, kind: output, shape index: {}]  }
   0x1   :  { %v1594_v0 = vld [vmem:[%s2064_s1] sm:$0xff]   ;;  %v1596_v2 = vld [vmem:[%s2065_s0 + $0x8] sm:$0xff]   ;;  %v1597_v3 = vld [vmem:[%s2065_s0 + $0x10] sm:$0xff]  }
   0x2   :  { %v1595_v1 = vld [vmem:[%s2065_s0] sm:$0xff]   ;;  %1400 = vmatprep.subr.bf16.mxu0 %v1594_v0  ;;  %v1598_v4 = vld [vmem:[%s2065_s0 + $0x18] sm:$0xff]   ;;  %v1600_v6 = vld [vmem:[%s2065_s0 + $0x28] sm:$0xff]   ;;  %v1772_v33 = vshrl.u32 %v53_v32, 7 }
   0x3   :  { %1401 = vmatpush3.bf16.msra.mxu0 %v1594_v0  ;;  %1402 = vmatprep.mubr.msk.bf16.mxu0 %vm143_vm0, %v1595_v1  ;;  %v1599_v5 = vld [vmem:[%s2065_s0 + $0x20] sm:$0xff]   ;;  %v1612_v8 = vld [vmem:[%s2066_s2 + $0x8] sm:$0xff]   ;;  %v1601_v9 = vld [vmem:[%s2065_s0 + $0x30] sm:$0xff]  }
   0x4   :  { %v1611_v7 = vld [vmem:[%s2066_s2] sm:$0xff]   ;;  %v1613_v10 = vld [vmem:[%s2066_s2 + $0x10] sm:$0xff]   ;;  %v1614_v11 = vld [vmem:[%s2066_s2 + $0x18] sm:$0xff]   ;;  %v55_v34 = vsub.s32 0, %v1772_v33 }
   0x5   :  { %1434 = vmatprep.subr.bf16.mxu1 %v1611_v7  ;;  %v1602_v12 = vld [vmem:[%s2065_s0 + $0x38] sm:$0xff]   ;;  %v1603_v13 = vld [vmem:[%s2065_s0 + $0x40] sm:$0xff]   ;;  %v1616_v15 = vld [vmem:[%s2066_s2 + $0x28] sm:$0xff]  }
   0x6   :  { %1403 = vmatmul.mubr.msk.bf16.vlgmr.msra.gmra.mrb[0].mxu0 %vm143_vm0, %v1596_v2  ;;  %1435 = vmatpush3.bf16.msra.mxu1 %v1611_v7  ;;  %v1615_v14 = vld [vmem:[%s2066_s2 + $0x20] sm:$0xff]   ;;  %v1604_v16 = vld [vmem:[%s2065_s0 + $0x48] sm:$0xff]   ;;  %v1605_v17 = vld [vmem:[%s2065_s0 + $0x50] sm:$0xff]  }
   0x7   :  { %1406 = vmatprep.mubr.msk.bf16.mxu0 %vm143_vm0, %v1597_v3  ;;  %1436 = vmatprep.subr.bf16.mxu1 %v1612_v8  ;;  %v1606_v18 = vld [vmem:[%s2065_s0 + $0x58] sm:$0xff]   ;;  %v1607_v19 = vld [vmem:[%s2065_s0 + $0x60] sm:$0xff]   ;;  %v1608_v20 = vld [vmem:[%s2065_s0 + $0x68] sm:$0xff]  }
   0x8   :  { %v1609_v21 = vld [vmem:[%s2065_s0 + $0x70] sm:$0xff]   ;;  %v1610_v22 = vld [vmem:[%s2065_s0 + $0x78] sm:$0xff]   ;;  %v1619_v25 = vld [vmem:[%s2066_s2 + $0x40] sm:$0xff]  }
   0x9   :  { %v1617_v23 = vld [vmem:[%s2066_s2 + $0x30] sm:$0xff]   ;;  %v1618_v24 = vld [vmem:[%s2066_s2 + $0x38] sm:$0xff]   ;;  %v1620_v26 = vld [vmem:[%s2066_s2 + $0x48] sm:$0xff]   ;;  %1482 = vmatprep.subr.bf16.mxu0 %v1619_v25 }
   0xa   :  { %1437 = vmatpush3.bf16.msra.mxu1 %v1612_v8  ;;  %1483 = vmatpush3.bf16.msra.mxu0 %v1619_v25  ;;  %v1621_v27 = vld [vmem:[%s2066_s2 + $0x50] sm:$0xff]   ;;  %v1622_v28 = vld [vmem:[%s2066_s2 + $0x58] sm:$0xff]   ;;  %v1623_v29 = vld [vmem:[%s2066_s2 + $0x60] sm:$0xff]  }
   0xb   :  { %1438 = vmatprep.subr.bf16.mxu1 %v1613_v10  ;;  %1484 = vmatprep.subr.bf16.mxu0 %v1620_v26  ;;  %v1624_v30 = vld [vmem:[%s2066_s2 + $0x68] sm:$0xff]   ;;  %v1625_v31 = vld [vmem:[%s2066_s2 + $0x70] sm:$0xff]   ;;  %v1778_v35 = vld [vmem:[%s2067_s3] sm:$0xf] }
   0xc   :  { %v1781_v36 = vrot.slane %v1778_v35, %v55_v34 }
   0xe   :  { %1407 = vmatmul.mubr.msk.bf16.gmra.mrb[4].mxu0 %vm143_vm0, %v1598_v4  ;;  %1439 = vmatpush3.bf16.msra.mxu1 %v1613_v10 }
   0xf   :  { %1410 = vmatprep.mubr.msk.bf16.mxu0 %vm143_vm0, %v1599_v5  ;;  %1440 = vmatprep.subr.bf16.mxu1 %v1614_v11 }
  0x10   :  { %1485 = vmatpush3.bf16.msra.mxu0 %v1620_v26 }
  0x11   :  { %1486 = vmatprep.subr.bf16.mxu0 %v1621_v27 }
  0x12   :  { %1441 = vmatpush3.bf16.msra.mxu1 %v1614_v11 }
  0x13   :  { %1442 = vmatprep.subr.bf16.mxu1 %v1615_v14 }
  0x14   :  { %1487 = vmatpush3.bf16.msra.mxu0 %v1621_v27 }
  0x15   :  { %1488 = vmatprep.subr.bf16.mxu0 %v1622_v28 }
  0x16   :  { %1411 = vmatmul.mubr.msk.bf16.gmra.mrb[8].mxu0 %vm143_vm0, %v1600_v6  ;;  %1443 = vmatpush3.bf16.msra.mxu1 %v1615_v14 }
  0x17   :  { %1414 = vmatprep.mubr.msk.bf16.mxu0 %vm143_vm0, %v1601_v9  ;;  %1444 = vmatprep.subr.bf16.mxu1 %v1616_v15 }
  0x18   :  { %1489 = vmatpush3.bf16.msra.mxu0 %v1622_v28 }
  0x19   :  { %1490 = vmatprep.subr.bf16.mxu0 %v1623_v29 }
  0x1a   :  { %1445 = vmatpush3.bf16.msra.mxu1 %v1616_v15 }
  0x1b   :  { %1446 = vmatprep.subr.bf16.mxu1 %v1617_v23 }
  0x1c   :  { %1491 = vmatpush3.bf16.msra.mxu0 %v1623_v29 }
  0x1d   :  { %1492 = vmatprep.subr.bf16.mxu0 %v1624_v30 }
  0x1e   :  { %1415 = vmatmul.mubr.msk.bf16.gmra.mrb[12].mxu0 %vm143_vm0, %v1602_v12  ;;  %1447 = vmatpush3.bf16.msra.mxu1 %v1617_v23 }
  0x1f   :  { %1418 = vmatprep.mubr.msk.bf16.mxu0 %vm143_vm0, %v1603_v13  ;;  %1448 = vmatprep.subr.bf16.mxu1 %v1618_v24 }
  0x20   :  { %1493 = vmatpush3.bf16.msra.mxu0 %v1624_v30 }
  0x21   :  { %1494 = vmatprep.subr.bf16.mxu0 %v1625_v31 }
  0x22   :  { %1449 = vmatpush3.bf16.msra.mxu1 %v1618_v24 }
  0x24   :  { %1495 = vmatpush3.bf16.msra.mxu0 %v1625_v31 }
  0x26   :  { %1419 = vmatmul.mubr.msk.bf16.gmra.mrb[16].mxu0 %vm143_vm0, %v1604_v16 }
  0x27   :  { %1422 = vmatprep.mubr.msk.bf16.mxu0 %vm143_vm0, %v1605_v17 }
  0x2e   :  { %1423 = vmatmul.mubr.msk.bf16.gmra.mrb[20].mxu0 %vm143_vm0, %v1606_v18 }
  0x2f   :  { %1426 = vmatprep.mubr.msk.bf16.mxu0 %vm143_vm0, %v1607_v19 }
  0x36   :  { %1427 = vmatmul.mubr.msk.bf16.gmra.mrb[24].mxu0 %vm143_vm0, %v1608_v20 }
  0x37   :  { %1430 = vmatprep.mubr.msk.bf16.mxu0 %vm143_vm0, %v1609_v21 }
  0x3e   :  { %1431 = vmatmul.mubr.msk.bf16.gmra.mrb[28].mxu0 %vm143_vm0, %v1610_v22 }
  0xd9   :  { %v1404_v37 = vpop.f32.mrb[0].mxu0 }
  0xda   :  { %v235_v38 = vadd.f32 %v1404_v37, %v1781_v36  ;;  %v226_v39 = vpop.f32.mrb[1].mxu0 }
  0xdb   :  { %v227_v40 = vadd.f32 %v226_v39, %v1781_v36  ;;  %v1405_v41 = vpop.f32.mrb[2].mxu0 }
  0xdc   :  { %v238_v42 = vadd.f32 %v1405_v41, %v1781_v36  ;;  %v229_v43 = vpop.f32.mrb[3].mxu0  ;;  %v355_v45 = vmax.f32 %v235_v38, 0.0 }
  0xdd   :  { %v230_v44 = vadd.f32 %v229_v43, %v1781_v36  ;;  %v353_v47 = vmax.f32 %v227_v40, 0.0 }
  0xde   :  { %v356_v46 = vmax.f32 %v238_v42, 0.0 }
  0xdf   :  { %v354_v48 = vmax.f32 %v230_v44, 0.0 }
  0xe0   :  { %v402_v49 = vpack.c.bf16 %v356_v46, %v355_v45 }
  0xe1   :  { %v1408_v50 = vpop.f32.mrb[4].mxu0  ;;  %v401_v51 = vpack.c.bf16 %v354_v48, %v353_v47 }
  0xe2   :  { %v251_v52 = vadd.f32 %v1408_v50, %v1781_v36  ;;  %v242_v53 = vpop.f32.mrb[5].mxu0 }
  0xe3   :  { %v243_v54 = vadd.f32 %v242_v53, %v1781_v36  ;;  %v1409_v55 = vpop.f32.mrb[6].mxu0  ;;  %1450 = vmatprep.mubr.bf16.mxu1 %v401_v51 }
  0xe4   :  { %v254_v56 = vadd.f32 %v1409_v55, %v1781_v36  ;;  %v245_v57 = vpop.f32.mrb[7].mxu0  ;;  %1451 = vmatmul.mubr.bf16.vlgmr.msra.gmra.mrb[0].mxu1 %v402_v49  ;;  %v359_v59 = vmax.f32 %v251_v52, 0.0 }
  0xe5   :  { %v246_v58 = vadd.f32 %v245_v57, %v1781_v36  ;;  %v357_v61 = vmax.f32 %v243_v54, 0.0 }
  0xe6   :  { %v360_v60 = vmax.f32 %v254_v56, 0.0 }
  0xe7   :  { %v358_v62 = vmax.f32 %v246_v58, 0.0 }
  0xe8   :  { %v404_v63 = vpack.c.bf16 %v360_v60, %v359_v59 }
  0xe9   :  { %v403_v0 = vpack.c.bf16 %v358_v62, %v357_v61  ;;  %v1412_v1 = vpop.f32.mrb[8].mxu0 }
  0xea   :  { %v267_v2 = vadd.f32 %v1412_v1, %v1781_v36  ;;  %v258_v3 = vpop.f32.mrb[9].mxu0 }
  0xeb   :  { %v259_v4 = vadd.f32 %v258_v3, %v1781_v36  ;;  %v1413_v5 = vpop.f32.mrb[10].mxu0  ;;  %1454 = vmatprep.mubr.bf16.mxu1 %v403_v0 }
  0xec   :  { %v270_v6 = vadd.f32 %v1413_v5, %v1781_v36  ;;  %v261_v7 = vpop.f32.mrb[11].mxu0  ;;  %1455 = vmatmul.mubr.bf16.gmra.mrb[4].mxu1 %v404_v63  ;;  %v363_v9 = vmax.f32 %v267_v2, 0.0 }
  0xed   :  { %v262_v8 = vadd.f32 %v261_v7, %v1781_v36  ;;  %v361_v11 = vmax.f32 %v259_v4, 0.0 }
  0xee   :  { %v364_v10 = vmax.f32 %v270_v6, 0.0 }
  0xef   :  { %v362_v12 = vmax.f32 %v262_v8, 0.0 }
  0xf0   :  { %v406_v13 = vpack.c.bf16 %v364_v10, %v363_v9 }
  0xf1   :  { %v405_v14 = vpack.c.bf16 %v362_v12, %v361_v11  ;;  %v1416_v15 = vpop.f32.mrb[12].mxu0 }
  0xf2   :  { %v283_v16 = vadd.f32 %v1416_v15, %v1781_v36  ;;  %v274_v17 = vpop.f32.mrb[13].mxu0 }
  0xf3   :  { %v275_v18 = vadd.f32 %v274_v17, %v1781_v36  ;;  %v1417_v19 = vpop.f32.mrb[14].mxu0  ;;  %1458 = vmatprep.mubr.bf16.mxu1 %v405_v14 }
  0xf4   :  { %v286_v20 = vadd.f32 %v1417_v19, %v1781_v36  ;;  %v277_v21 = vpop.f32.mrb[15].mxu0  ;;  %1459 = vmatmul.mubr.bf16.gmra.mrb[8].mxu1 %v406_v13  ;;  %v367_v23 = vmax.f32 %v283_v16, 0.0 }
  0xf5   :  { %v278_v22 = vadd.f32 %v277_v21, %v1781_v36  ;;  %v365_v25 = vmax.f32 %v275_v18, 0.0 }
  0xf6   :  { %v368_v24 = vmax.f32 %v286_v20, 0.0 }
  0xf7   :  { %v366_v26 = vmax.f32 %v278_v22, 0.0 }
  0xf8   :  { %v408_v27 = vpack.c.bf16 %v368_v24, %v367_v23  ;;  %v1626_v24 = vld [vmem:[%s2066_s2 + $0x78] sm:$0xff]  }
  0xf9   :  { %v407_v28 = vpack.c.bf16 %v366_v26, %v365_v25  ;;  %v1420_v29 = vpop.f32.mrb[16].mxu0  ;;  %1496 = vmatprep.subr.bf16.mxu0 %v1626_v24  ;;  %v1627_v25 = vld [vmem:[%s2066_s2 + $0x80] sm:$0xff]   ;;  %v1629_v26 = vld [vmem:[%s2066_s2 + $0x90] sm:$0xff]  }
  0xfa   :  { %v299_v30 = vadd.f32 %v1420_v29, %v1781_v36  ;;  %v290_v31 = vpop.f32.mrb[17].mxu0  ;;  %1497 = vmatpush3.bf16.msra.mxu0 %v1626_v24  ;;  %1578 = vmatprep.subr.bf16.mxu1 %v1627_v25  ;;  %v1843_v29 = vld [vmem:[%s2066_s2 + $0xa8] sm:$0xff]  }
  0xfb   :  { %v291_v32 = vadd.f32 %v290_v31, %v1781_v36  ;;  %v1421_v34 = vpop.f32.mrb[18].mxu0  ;;  %1462 = vmatprep.mubr.bf16.mxu1 %v407_v28  ;;  %1530 = vmatprep.subr.bf16.mxu0 %v1627_v25  ;;  %v1836_v28 = vld [vmem:[%s2066_s2 + $0xa0] sm:$0xff]  }
  0xfc   :  { %v302_v37 = vadd.f32 %v1421_v34, %v1781_v36  ;;  %v293_v38 = vpop.f32.mrb[19].mxu0  ;;  %1463 = vmatmul.mubr.bf16.gmra.mrb[12].mxu1 %v408_v27  ;;  %v371_v40 = vmax.f32 %v299_v30, 0.0  ;;  %v1830_v27 = vld [vmem:[%s2066_s2 + $0x98] sm:$0xff]   ;;  %v419_v30 = vsub.s32 1, %v1772_v33 }
  0xfd   :  { %v294_v39 = vadd.f32 %v293_v38, %v1781_v36  ;;  %v369_v42 = vmax.f32 %v291_v32, 0.0  ;;  %1586 = vmatpush3.bf16.msra.mxu1 %v1627_v25 }
  0xfe   :  { %v372_v41 = vmax.f32 %v302_v37, 0.0  ;;  %v1850_v31 = vrot.slane %v1778_v35, %v419_v30 }
  0xff   :  { %v370_v43 = vmax.f32 %v294_v39, 0.0 }
 0x100   :  { %v410_v44 = vpack.c.bf16 %v372_v41, %v371_v40 }
 0x101   :  { %v409_v45 = vpack.c.bf16 %v370_v43, %v369_v42  ;;  %v1424_v46 = vpop.f32.mrb[20].mxu0 }
 0x102   :  { %v315_v47 = vadd.f32 %v1424_v46, %v1781_v36  ;;  %v306_v48 = vpop.f32.mrb[21].mxu0 }
 0x103   :  { %v307_v49 = vadd.f32 %v306_v48, %v1781_v36  ;;  %v1425_v50 = vpop.f32.mrb[22].mxu0  ;;  %1466 = vmatprep.mubr.bf16.mxu1 %v409_v45 }
 0x104   :  { %v318_v51 = vadd.f32 %v1425_v50, %v1781_v36  ;;  %v309_v52 = vpop.f32.mrb[23].mxu0  ;;  %1467 = vmatmul.mubr.bf16.gmra.mrb[16].mxu1 %v410_v44  ;;  %v375_v54 = vmax.f32 %v315_v47, 0.0 }
 0x105   :  { %v310_v53 = vadd.f32 %v309_v52, %v1781_v36  ;;  %v373_v56 = vmax.f32 %v307_v49, 0.0 }
 0x106   :  { %v376_v55 = vmax.f32 %v318_v51, 0.0 }
 0x107   :  { %v374_v57 = vmax.f32 %v310_v53, 0.0 }
 0x108   :  { %v412_v58 = vpack.c.bf16 %v376_v55, %v375_v54 }
 0x109   :  { %v411_v59 = vpack.c.bf16 %v374_v57, %v373_v56  ;;  %v1428_v60 = vpop.f32.mrb[24].mxu0 }
 0x10a   :  { %v331_v61 = vadd.f32 %v1428_v60, %v1781_v36  ;;  %v322_v62 = vpop.f32.mrb[25].mxu0 }
 0x10b   :  { %v323_v63 = vadd.f32 %v322_v62, %v1781_v36  ;;  %v1429_v0 = vpop.f32.mrb[26].mxu0  ;;  %1470 = vmatprep.mubr.bf16.mxu1 %v411_v59 }
 0x10c   :  { %v334_v1 = vadd.f32 %v1429_v0, %v1781_v36  ;;  %v325_v2 = vpop.f32.mrb[27].mxu0  ;;  %1471 = vmatmul.mubr.bf16.gmra.mrb[20].mxu1 %v412_v58  ;;  %v379_v4 = vmax.f32 %v331_v61, 0.0 }
 0x10d   :  { %v326_v3 = vadd.f32 %v325_v2, %v1781_v36  ;;  %v377_v6 = vmax.f32 %v323_v63, 0.0 }
 0x10e   :  { %v380_v5 = vmax.f32 %v334_v1, 0.0 }
 0x10f   :  { %v378_v7 = vmax.f32 %v326_v3, 0.0 }
 0x110   :  { %v414_v8 = vpack.c.bf16 %v380_v5, %v379_v4 }
 0x111   :  { %v413_v9 = vpack.c.bf16 %v378_v7, %v377_v6  ;;  %v1432_v10 = vpop.f32.mrb[28].mxu0 }
 0x112   :  { %v347_v11 = vadd.f32 %v1432_v10, %v1781_v36  ;;  %v338_v12 = vpop.f32.mrb[29].mxu0 }
 0x113   :  { %v339_v13 = vadd.f32 %v338_v12, %v1781_v36  ;;  %v1433_v14 = vpop.f32.mrb[30].mxu0  ;;  %1474 = vmatprep.mubr.bf16.mxu1 %v413_v9 }
 0x114   :  { %v350_v15 = vadd.f32 %v1433_v14, %v1781_v36  ;;  %v341_v16 = vpop.f32.mrb[31].mxu0  ;;  %1475 = vmatmul.mubr.bf16.gmra.mrb[24].mxu1 %v414_v8  ;;  %v383_v18 = vmax.f32 %v347_v11, 0.0 }
 0x115   :  { %v342_v17 = vadd.f32 %v341_v16, %v1781_v36  ;;  %v381_v20 = vmax.f32 %v339_v13, 0.0  ;;  %v1628_v36 = vld [vmem:[%s2066_s2 + $0x88] sm:$0xff]  }
 0x116   :  { %v384_v19 = vmax.f32 %v350_v15, 0.0  ;;  %1579 = vmatprep.subr.bf16.mxu1 %v1628_v36 }
 0x117   :  { %v382_v21 = vmax.f32 %v342_v17, 0.0  ;;  %1587 = vmatpush3.bf16.msra.mxu1 %v1628_v36 }
 0x118   :  { %v416_v22 = vpack.c.bf16 %v384_v19, %v383_v18  ;;  %1580 = vmatprep.subr.bf16.mxu1 %v1629_v26 }
 0x119   :  { %v415_v23 = vpack.c.bf16 %v382_v21, %v381_v20 }
 0x11b   :  { %1478 = vmatprep.mubr.bf16.mxu1 %v415_v23  ;;  %1588 = vmatpush3.bf16.msra.mxu1 %v1629_v26 }
 0x11c   :  { %1479 = vmatmul.mubr.bf16.gmra.mrb[28].mxu1 %v416_v22  ;;  %1581 = vmatprep.subr.bf16.mxu1 %v1830_v27 }
 0x11f   :  { %1589 = vmatpush3.bf16.msra.mxu1 %v1830_v27 }
 0x120   :  { %1582 = vmatprep.subr.bf16.mxu1 %v1836_v28 }
 0x123   :  { %1590 = vmatpush3.bf16.msra.mxu1 %v1836_v28 }
 0x124   :  { %1583 = vmatprep.subr.bf16.mxu1 %v1843_v29 }
 0x127   :  { %1591 = vmatpush3.bf16.msra.mxu1 %v1843_v29 }
 0x1b7   :  { %v1452_v32 = vpop.f32.mrb[0].mxu1 }
 0x1b8   :  { %v512_v34 = vadd.f32 %v1452_v32, %v1850_v31  ;;  %v503_v37 = vpop.f32.mrb[1].mxu1 }
 0x1b9   :  { %v504_v38 = vadd.f32 %v503_v37, %v1850_v31  ;;  %v1453_v39 = vpop.f32.mrb[2].mxu1 }
 0x1ba   :  { %v515_v40 = vadd.f32 %v1453_v39, %v1850_v31  ;;  %v506_v41 = vpop.f32.mrb[3].mxu1  ;;  %v632_v43 = vmax.f32 %v512_v34, 0.0 }
 0x1bb   :  { %v507_v42 = vadd.f32 %v506_v41, %v1850_v31  ;;  %v630_v45 = vmax.f32 %v504_v38, 0.0 }
 0x1bc   :  { %v633_v44 = vmax.f32 %v515_v40, 0.0 }
 0x1bd   :  { %v631_v46 = vmax.f32 %v507_v42, 0.0 }
 0x1be   :  { %v680_v47 = vpack.c.bf16 %v633_v44, %v632_v43 }
 0x1bf   :  { %v679_v48 = vpack.c.bf16 %v631_v46, %v630_v45  ;;  %v1456_v49 = vpop.f32.mrb[4].mxu1 }
 0x1c0   :  { %v528_v50 = vadd.f32 %v1456_v49, %v1850_v31  ;;  %v519_v51 = vpop.f32.mrb[5].mxu1 }
 0x1c1   :  { %v520_v52 = vadd.f32 %v519_v51, %v1850_v31  ;;  %v1457_v53 = vpop.f32.mrb[6].mxu1  ;;  %1498 = vmatprep.mubr.bf16.mxu0 %v679_v48 }
 0x1c2   :  { %v531_v54 = vadd.f32 %v1457_v53, %v1850_v31  ;;  %v522_v55 = vpop.f32.mrb[7].mxu1  ;;  %1499 = vmatmul.mubr.bf16.vlgmr.msra.gmra.mrb[32].mxu0 %v680_v47  ;;  %v636_v57 = vmax.f32 %v528_v50, 0.0 }
 0x1c3   :  { %v523_v56 = vadd.f32 %v522_v55, %v1850_v31  ;;  %1531 = vmatpush3.bf16.msra.mxu0 %v1627_v25  ;;  %v634_v59 = vmax.f32 %v520_v52, 0.0 }
 0x1c4   :  { %v637_v58 = vmax.f32 %v531_v54, 0.0  ;;  %1532 = vmatprep.subr.bf16.mxu0 %v1628_v36 }
 0x1c5   :  { %v635_v60 = vmax.f32 %v523_v56, 0.0 }
 0x1c6   :  { %v682_v61 = vpack.c.bf16 %v637_v58, %v636_v57 }
 0x1c7   :  { %v681_v62 = vpack.c.bf16 %v635_v60, %v634_v59  ;;  %v1460_v63 = vpop.f32.mrb[8].mxu1  ;;  %1533 = vmatpush3.bf16.msra.mxu0 %v1628_v36 }
 0x1c8   :  { %v544_v0 = vadd.f32 %v1460_v63, %v1850_v31  ;;  %v535_v1 = vpop.f32.mrb[9].mxu1  ;;  %1534 = vmatprep.subr.bf16.mxu0 %v1629_v26 }
 0x1c9   :  { %v536_v2 = vadd.f32 %v535_v1, %v1850_v31  ;;  %v1461_v3 = vpop.f32.mrb[10].mxu1  ;;  %1502 = vmatprep.mubr.bf16.mxu0 %v681_v62 }
 0x1ca   :  { %v547_v4 = vadd.f32 %v1461_v3, %v1850_v31  ;;  %v538_v5 = vpop.f32.mrb[11].mxu1  ;;  %1503 = vmatmul.mubr.bf16.gmra.mrb[36].mxu0 %v682_v61  ;;  %v640_v7 = vmax.f32 %v544_v0, 0.0 }
 0x1cb   :  { %v539_v6 = vadd.f32 %v538_v5, %v1850_v31  ;;  %1535 = vmatpush3.bf16.msra.mxu0 %v1629_v26  ;;  %v638_v9 = vmax.f32 %v536_v2, 0.0 }
 0x1cc   :  { %v641_v8 = vmax.f32 %v547_v4, 0.0  ;;  %1536 = vmatprep.subr.bf16.mxu0 %v1830_v27 }
 0x1cd   :  { %v639_v10 = vmax.f32 %v539_v6, 0.0 }
 0x1ce   :  { %v684_v11 = vpack.c.bf16 %v641_v8, %v640_v7 }
 0x1cf   :  { %v683_v12 = vpack.c.bf16 %v639_v10, %v638_v9  ;;  %v1464_v13 = vpop.f32.mrb[12].mxu1  ;;  %1537 = vmatpush3.bf16.msra.mxu0 %v1830_v27 }
 0x1d0   :  { %v560_v14 = vadd.f32 %v1464_v13, %v1850_v31  ;;  %v551_v15 = vpop.f32.mrb[13].mxu1  ;;  %1538 = vmatprep.subr.bf16.mxu0 %v1836_v28 }
 0x1d1   :  { %v552_v16 = vadd.f32 %v551_v15, %v1850_v31  ;;  %v1465_v17 = vpop.f32.mrb[14].mxu1  ;;  %1506 = vmatprep.mubr.bf16.mxu0 %v683_v12 }
 0x1d2   :  { %v563_v18 = vadd.f32 %v1465_v17, %v1850_v31  ;;  %v554_v19 = vpop.f32.mrb[15].mxu1  ;;  %1507 = vmatmul.mubr.bf16.gmra.mrb[40].mxu0 %v684_v11  ;;  %v644_v21 = vmax.f32 %v560_v14, 0.0 }
 0x1d3   :  { %v555_v20 = vadd.f32 %v554_v19, %v1850_v31  ;;  %1539 = vmatpush3.bf16.msra.mxu0 %v1836_v28  ;;  %v642_v23 = vmax.f32 %v552_v16, 0.0 }
 0x1d4   :  { %v645_v22 = vmax.f32 %v563_v18, 0.0  ;;  %1540 = vmatprep.subr.bf16.mxu0 %v1843_v29 }
 0x1d5   :  { %v643_v24 = vmax.f32 %v555_v20, 0.0 }
 0x1d6   :  { %v686_v25 = vpack.c.bf16 %v645_v22, %v644_v21  ;;  %v1633_v22 = vld [vmem:[%s2066_s2 + $0xb0] sm:$0xff]  }
 0x1d7   :  { %v685_v36 = vpack.c.bf16 %v643_v24, %v642_v23  ;;  %v1468_v26 = vpop.f32.mrb[16].mxu1  ;;  %1541 = vmatpush3.bf16.msra.mxu0 %v1843_v29  ;;  %1584 = vmatprep.subr.bf16.mxu1 %v1633_v22  ;;  %v697_v23 = vsub.s32 2, %v1772_v33 }
 0x1d8   :  { %v576_v27 = vadd.f32 %v1468_v26, %v1850_v31  ;;  %v567_v30 = vpop.f32.mrb[17].mxu1  ;;  %1542 = vmatprep.subr.bf16.mxu0 %v1633_v22  ;;  %1592 = vmatpush3.bf16.msra.mxu1 %v1633_v22 }
 0x1d9   :  { %v568_v32 = vadd.f32 %v567_v30, %v1850_v31  ;;  %v1469_v34 = vpop.f32.mrb[18].mxu1  ;;  %1510 = vmatprep.mubr.bf16.mxu0 %v685_v36  ;;  %v1898_v24 = vrot.slane %v1778_v35, %v697_v23 }
 0x1da   :  { %v579_v28 = vadd.f32 %v1469_v34, %v1850_v31  ;;  %v570_v37 = vpop.f32.mrb[19].mxu1  ;;  %1511 = vmatmul.mubr.bf16.gmra.mrb[44].mxu0 %v686_v25  ;;  %v648_v39 = vmax.f32 %v576_v27, 0.0 }
 0x1db   :  { %v571_v38 = vadd.f32 %v570_v37, %v1850_v31  ;;  %v646_v41 = vmax.f32 %v568_v32, 0.0  ;;  %1543 = vmatpush3.bf16.msra.mxu0 %v1633_v22 }
 0x1dc   :  { %v649_v40 = vmax.f32 %v579_v28, 0.0 }
 0x1dd   :  { %v647_v42 = vmax.f32 %v571_v38, 0.0 }
 0x1de   :  { %v688_v43 = vpack.c.bf16 %v649_v40, %v648_v39 }
 0x1df   :  { %v687_v44 = vpack.c.bf16 %v647_v42, %v646_v41  ;;  %v1472_v29 = vpop.f32.mrb[20].mxu1 }
 0x1e0   :  { %v592_v45 = vadd.f32 %v1472_v29, %v1850_v31  ;;  %v583_v46 = vpop.f32.mrb[21].mxu1 }
 0x1e1   :  { %v584_v47 = vadd.f32 %v583_v46, %v1850_v31  ;;  %v1473_v48 = vpop.f32.mrb[22].mxu1  ;;  %1514 = vmatprep.mubr.bf16.mxu0 %v687_v44 }
 0x1e2   :  { %v595_v49 = vadd.f32 %v1473_v48, %v1850_v31  ;;  %v586_v50 = vpop.f32.mrb[23].mxu1  ;;  %1515 = vmatmul.mubr.bf16.gmra.mrb[48].mxu0 %v688_v43  ;;  %v652_v52 = vmax.f32 %v592_v45, 0.0 }
 0x1e3   :  { %v587_v51 = vadd.f32 %v586_v50, %v1850_v31  ;;  %v650_v54 = vmax.f32 %v584_v47, 0.0 }
 0x1e4   :  { %v653_v53 = vmax.f32 %v595_v49, 0.0 }
 0x1e5   :  { %v651_v55 = vmax.f32 %v587_v51, 0.0 }
 0x1e6   :  { %v690_v56 = vpack.c.bf16 %v653_v53, %v652_v52 }
 0x1e7   :  { %v689_v57 = vpack.c.bf16 %v651_v55, %v650_v54  ;;  %v1476_v58 = vpop.f32.mrb[24].mxu1 }
 0x1e8   :  { %v608_v59 = vadd.f32 %v1476_v58, %v1850_v31  ;;  %v599_v60 = vpop.f32.mrb[25].mxu1 }
 0x1e9   :  { %v600_v61 = vadd.f32 %v599_v60, %v1850_v31  ;;  %v1477_v62 = vpop.f32.mrb[26].mxu1  ;;  %1518 = vmatprep.mubr.bf16.mxu0 %v689_v57 }
 0x1ea   :  { %v611_v63 = vadd.f32 %v1477_v62, %v1850_v31  ;;  %v602_v0 = vpop.f32.mrb[27].mxu1  ;;  %1519 = vmatmul.mubr.bf16.gmra.mrb[52].mxu0 %v690_v56  ;;  %v656_v2 = vmax.f32 %v608_v59, 0.0 }
 0x1eb   :  { %v603_v1 = vadd.f32 %v602_v0, %v1850_v31  ;;  %v654_v4 = vmax.f32 %v600_v61, 0.0 }
 0x1ec   :  { %v657_v3 = vmax.f32 %v611_v63, 0.0 }
 0x1ed   :  { %v655_v5 = vmax.f32 %v603_v1, 0.0 }
 0x1ee   :  { %v692_v6 = vpack.c.bf16 %v657_v3, %v656_v2 }
 0x1ef   :  { %v691_v7 = vpack.c.bf16 %v655_v5, %v654_v4  ;;  %v1480_v8 = vpop.f32.mrb[28].mxu1 }
 0x1f0   :  { %v624_v9 = vadd.f32 %v1480_v8, %v1850_v31  ;;  %v615_v10 = vpop.f32.mrb[29].mxu1 }
 0x1f1   :  { %v616_v11 = vadd.f32 %v615_v10, %v1850_v31  ;;  %v1481_v12 = vpop.f32.mrb[30].mxu1  ;;  %1522 = vmatprep.mubr.bf16.mxu0 %v691_v7 }
 0x1f2   :  { %v627_v13 = vadd.f32 %v1481_v12, %v1850_v31  ;;  %v618_v14 = vpop.f32.mrb[31].mxu1  ;;  %1523 = vmatmul.mubr.bf16.gmra.mrb[56].mxu0 %v692_v6  ;;  %v660_v16 = vmax.f32 %v624_v9, 0.0 }
 0x1f3   :  { %v619_v15 = vadd.f32 %v618_v14, %v1850_v31  ;;  %v658_v18 = vmax.f32 %v616_v11, 0.0  ;;  %v1634_v31 = vld [vmem:[%s2066_s2 + $0xb8] sm:$0xff]  }
 0x1f4   :  { %v661_v17 = vmax.f32 %v627_v13, 0.0  ;;  %1544 = vmatprep.subr.bf16.mxu0 %v1634_v31  ;;  %1585 = vmatprep.subr.bf16.mxu1 %v1634_v31 }
 0x1f5   :  { %v659_v19 = vmax.f32 %v619_v15, 0.0  ;;  %1545 = vmatpush3.bf16.msra.mxu0 %v1634_v31  ;;  %1593 = vmatpush3.bf16.msra.mxu1 %v1634_v31 }
 0x1f6   :  { %v694_v20 = vpack.c.bf16 %v661_v17, %v660_v16 }
 0x1f7   :  { %v693_v21 = vpack.c.bf16 %v659_v19, %v658_v18 }
 0x1f9   :  { %1526 = vmatprep.mubr.bf16.mxu0 %v693_v21 }
 0x1fa   :  { %1527 = vmatmul.mubr.bf16.gmra.mrb[60].mxu0 %v694_v20 }
 0x295   :  { %v1500_v25 = vpop.f32.mrb[32].mxu0 }
 0x296   :  { %v790_v36 = vadd.f32 %v1500_v25, %v1898_v24  ;;  %v781_v26 = vpop.f32.mrb[33].mxu0 }
 0x297   :  { %v782_v27 = vadd.f32 %v781_v26, %v1898_v24  ;;  %v1501_v30 = vpop.f32.mrb[34].mxu0 }
 0x298   :  { %v793_v32 = vadd.f32 %v1501_v30, %v1898_v24  ;;  %v784_v34 = vpop.f32.mrb[35].mxu0  ;;  %v910_v37 = vmax.f32 %v790_v36, 0.0 }
 0x299   :  { %v785_v28 = vadd.f32 %v784_v34, %v1898_v24  ;;  %v908_v39 = vmax.f32 %v782_v27, 0.0 }
 0x29a   :  { %v911_v38 = vmax.f32 %v793_v32, 0.0 }
 0x29b   :  { %v909_v40 = vmax.f32 %v785_v28, 0.0 }
 0x29c   :  { %v958_v41 = vpack.c.bf16 %v911_v38, %v910_v37 }
 0x29d   :  { %v957_v42 = vpack.c.bf16 %v909_v40, %v908_v39  ;;  %v1504_v43 = vpop.f32.mrb[36].mxu0 }
 0x29e   :  { %v806_v44 = vadd.f32 %v1504_v43, %v1898_v24  ;;  %v797_v29 = vpop.f32.mrb[37].mxu0 }
 0x29f   :  { %v798_v45 = vadd.f32 %v797_v29, %v1898_v24  ;;  %v1505_v46 = vpop.f32.mrb[38].mxu0  ;;  %1546 = vmatprep.mubr.bf16.mxu0 %v957_v42 }
 0x2a0   :  { %v809_v47 = vadd.f32 %v1505_v46, %v1898_v24  ;;  %v800_v48 = vpop.f32.mrb[39].mxu0  ;;  %1547 = vmatmul.mubr.bf16.vlgmr.msra.gmra.mrb[64].mxu0 %v958_v41  ;;  %v914_v50 = vmax.f32 %v806_v44, 0.0 }
 0x2a1   :  { %v801_v49 = vadd.f32 %v800_v48, %v1898_v24  ;;  %v912_v52 = vmax.f32 %v798_v45, 0.0 }
 0x2a2   :  { %v915_v51 = vmax.f32 %v809_v47, 0.0 }
 0x2a3   :  { %v913_v53 = vmax.f32 %v801_v49, 0.0 }
 0x2a4   :  { %v960_v54 = vpack.c.bf16 %v915_v51, %v914_v50 }
 0x2a5   :  { %v959_v55 = vpack.c.bf16 %v913_v53, %v912_v52  ;;  %v1508_v56 = vpop.f32.mrb[40].mxu0 }
 0x2a6   :  { %v822_v57 = vadd.f32 %v1508_v56, %v1898_v24  ;;  %v813_v58 = vpop.f32.mrb[41].mxu0 }
 0x2a7   :  { %v814_v59 = vadd.f32 %v813_v58, %v1898_v24  ;;  %v1509_v60 = vpop.f32.mrb[42].mxu0  ;;  %1550 = vmatprep.mubr.bf16.mxu1 %v959_v55 }
 0x2a8   :  { %v825_v61 = vadd.f32 %v1509_v60, %v1898_v24  ;;  %v816_v62 = vpop.f32.mrb[43].mxu0  ;;  %1551 = vmatmul.mubr.bf16.vlgmr.msra.gmra.mrb[32].mxu1 %v960_v54  ;;  %v918_v0 = vmax.f32 %v822_v57, 0.0 }
 0x2a9   :  { %v817_v63 = vadd.f32 %v816_v62, %v1898_v24  ;;  %v916_v2 = vmax.f32 %v814_v59, 0.0 }
 0x2aa   :  { %v919_v1 = vmax.f32 %v825_v61, 0.0 }
 0x2ab   :  { %v917_v3 = vmax.f32 %v817_v63, 0.0 }
 0x2ac   :  { %v962_v4 = vpack.c.bf16 %v919_v1, %v918_v0 }
 0x2ad   :  { %v961_v5 = vpack.c.bf16 %v917_v3, %v916_v2  ;;  %v1512_v6 = vpop.f32.mrb[44].mxu0 }
 0x2ae   :  { %v838_v7 = vadd.f32 %v1512_v6, %v1898_v24  ;;  %v829_v8 = vpop.f32.mrb[45].mxu0 }
 0x2af   :  { %v830_v9 = vadd.f32 %v829_v8, %v1898_v24  ;;  %v1513_v10 = vpop.f32.mrb[46].mxu0  ;;  %1554 = vmatprep.mubr.bf16.mxu1 %v961_v5 }
 0x2b0   :  { %v841_v11 = vadd.f32 %v1513_v10, %v1898_v24  ;;  %v832_v12 = vpop.f32.mrb[47].mxu0  ;;  %1555 = vmatmul.mubr.bf16.gmra.mrb[36].mxu1 %v962_v4  ;;  %v922_v14 = vmax.f32 %v838_v7, 0.0 }
 0x2b1   :  { %v833_v13 = vadd.f32 %v832_v12, %v1898_v24  ;;  %v920_v16 = vmax.f32 %v830_v9, 0.0 }
 0x2b2   :  { %v923_v15 = vmax.f32 %v841_v11, 0.0 }
 0x2b3   :  { %v921_v17 = vmax.f32 %v833_v13, 0.0 }
 0x2b4   :  { %v964_v18 = vpack.c.bf16 %v923_v15, %v922_v14  ;;  %v975_v15 = vsub.s32 3, %v1772_v33 }
 0x2b5   :  { %v963_v19 = vpack.c.bf16 %v921_v17, %v920_v16  ;;  %v1516_v20 = vpop.f32.mrb[48].mxu0 }
 0x2b6   :  { %v854_v21 = vadd.f32 %v1516_v20, %v1898_v24  ;;  %v845_v22 = vpop.f32.mrb[49].mxu0  ;;  %v1934_v16 = vrot.slane %v1778_v35, %v975_v15 }
 0x2b7   :  { %v846_v31 = vadd.f32 %v845_v22, %v1898_v24  ;;  %v1517_v23 = vpop.f32.mrb[50].mxu0  ;;  %1558 = vmatprep.mubr.bf16.mxu1 %v963_v19 }
 0x2b8   :  { %v857_v25 = vadd.f32 %v1517_v23, %v1898_v24  ;;  %v848_v36 = vpop.f32.mrb[51].mxu0  ;;  %1559 = vmatmul.mubr.bf16.gmra.mrb[40].mxu1 %v964_v18  ;;  %v926_v27 = vmax.f32 %v854_v21, 0.0 }
 0x2b9   :  { %v849_v26 = vadd.f32 %v848_v36, %v1898_v24  ;;  %v924_v32 = vmax.f32 %v846_v31, 0.0 }
 0x2ba   :  { %v927_v30 = vmax.f32 %v857_v25, 0.0 }
 0x2bb   :  { %v925_v34 = vmax.f32 %v849_v26, 0.0 }
 0x2bc   :  { %v966_v28 = vpack.c.bf16 %v927_v30, %v926_v27 }
 0x2bd   :  { %v965_v37 = vpack.c.bf16 %v925_v34, %v924_v32  ;;  %v1520_v38 = vpop.f32.mrb[52].mxu0 }
 0x2be   :  { %v870_v39 = vadd.f32 %v1520_v38, %v1898_v24  ;;  %v861_v40 = vpop.f32.mrb[53].mxu0 }
 0x2bf   :  { %v862_v41 = vadd.f32 %v861_v40, %v1898_v24  ;;  %v1521_v42 = vpop.f32.mrb[54].mxu0  ;;  %1562 = vmatprep.mubr.bf16.mxu1 %v965_v37 }
 0x2c0   :  { %v873_v43 = vadd.f32 %v1521_v42, %v1898_v24  ;;  %v864_v44 = vpop.f32.mrb[55].mxu0  ;;  %1563 = vmatmul.mubr.bf16.gmra.mrb[44].mxu1 %v966_v28  ;;  %v930_v45 = vmax.f32 %v870_v39, 0.0 }
 0x2c1   :  { %v865_v29 = vadd.f32 %v864_v44, %v1898_v24  ;;  %v928_v47 = vmax.f32 %v862_v41, 0.0 }
 0x2c2   :  { %v931_v46 = vmax.f32 %v873_v43, 0.0 }
 0x2c3   :  { %v929_v48 = vmax.f32 %v865_v29, 0.0 }
 0x2c4   :  { %v968_v49 = vpack.c.bf16 %v931_v46, %v930_v45 }
 0x2c5   :  { %v967_v50 = vpack.c.bf16 %v929_v48, %v928_v47  ;;  %v1524_v51 = vpop.f32.mrb[56].mxu0 }
 0x2c6   :  { %v886_v52 = vadd.f32 %v1524_v51, %v1898_v24  ;;  %v877_v53 = vpop.f32.mrb[57].mxu0 }
 0x2c7   :  { %v878_v54 = vadd.f32 %v877_v53, %v1898_v24  ;;  %v1525_v55 = vpop.f32.mrb[58].mxu0  ;;  %1566 = vmatprep.mubr.bf16.mxu1 %v967_v50 }
 0x2c8   :  { %v889_v56 = vadd.f32 %v1525_v55, %v1898_v24  ;;  %v880_v57 = vpop.f32.mrb[59].mxu0  ;;  %1567 = vmatmul.mubr.bf16.gmra.mrb[48].mxu1 %v968_v49  ;;  %v934_v59 = vmax.f32 %v886_v52, 0.0 }
 0x2c9   :  { %v881_v58 = vadd.f32 %v880_v57, %v1898_v24  ;;  %v932_v61 = vmax.f32 %v878_v54, 0.0 }
 0x2ca   :  { %v935_v60 = vmax.f32 %v889_v56, 0.0 }
 0x2cb   :  { %v933_v62 = vmax.f32 %v881_v58, 0.0 }
 0x2cc   :  { %v970_v63 = vpack.c.bf16 %v935_v60, %v934_v59 }
 0x2cd   :  { %v969_v0 = vpack.c.bf16 %v933_v62, %v932_v61  ;;  %v1528_v1 = vpop.f32.mrb[60].mxu0 }
 0x2ce   :  { %v902_v2 = vadd.f32 %v1528_v1, %v1898_v24  ;;  %v893_v3 = vpop.f32.mrb[61].mxu0 }
 0x2cf   :  { %v894_v4 = vadd.f32 %v893_v3, %v1898_v24  ;;  %v1529_v5 = vpop.f32.mrb[62].mxu0  ;;  %1570 = vmatprep.mubr.bf16.mxu1 %v969_v0 }
 0x2d0   :  { %v905_v6 = vadd.f32 %v1529_v5, %v1898_v24  ;;  %v896_v7 = vpop.f32.mrb[63].mxu0  ;;  %1571 = vmatmul.mubr.bf16.gmra.mrb[52].mxu1 %v970_v63  ;;  %v938_v9 = vmax.f32 %v902_v2, 0.0 }
 0x2d1   :  { %v897_v8 = vadd.f32 %v896_v7, %v1898_v24  ;;  %v936_v11 = vmax.f32 %v894_v4, 0.0 }
 0x2d2   :  { %v939_v10 = vmax.f32 %v905_v6, 0.0 }
 0x2d3   :  { %v937_v12 = vmax.f32 %v897_v8, 0.0 }
 0x2d4   :  { %v972_v13 = vpack.c.bf16 %v939_v10, %v938_v9 }
 0x2d5   :  { %v971_v14 = vpack.c.bf16 %v937_v12, %v936_v11 }
 0x2d7   :  { %1574 = vmatprep.mubr.bf16.mxu1 %v971_v14 }
 0x2d8   :  { %1575 = vmatmul.mubr.bf16.gmra.mrb[56].mxu1 %v972_v13 }
 0x373   :  { %v1548_v17 = vpop.f32.mrb[64].mxu0 }
 0x374   :  { %v1068_v18 = vadd.f32 %v1548_v17, %v1934_v16  ;;  %v1059_v19 = vpop.f32.mrb[65].mxu0 }
 0x375   :  { %v1060_v20 = vadd.f32 %v1059_v19, %v1934_v16  ;;  %v1549_v24 = vpop.f32.mrb[66].mxu0 }
 0x376   :  { %1188 = vst [vmem:[%s2068_s4 + $0x10] sm:$0xff] %v1068_v18  ;;  %v1071_v21 = vadd.f32 %v1549_v24, %v1934_v16  ;;  %v1062_v22 = vpop.f32.mrb[67].mxu0 }
 0x377   :  { %1186 = vst [vmem:[%s2068_s4] sm:$0xff] %v1060_v20  ;;  %v1063_v33 = vadd.f32 %v1062_v22, %v1934_v16 }
 0x378   :  { %1189 = vst [vmem:[%s2068_s4 + $0x18] sm:$0xff] %v1071_v21 }
 0x379   :  { %1187 = vst [vmem:[%s2068_s4 + $0x8] sm:$0xff] %v1063_v33 }
 0x37b   :  { %v1552_v35 = vpop.f32.mrb[32].mxu1 }
 0x37c   :  { %v1084_v31 = vadd.f32 %v1552_v35, %v1934_v16  ;;  %v1075_v23 = vpop.f32.mrb[33].mxu1 }
 0x37d   :  { %v1076_v25 = vadd.f32 %v1075_v23, %v1934_v16  ;;  %v1553_v36 = vpop.f32.mrb[34].mxu1 }
 0x37e   :  { %1192 = vst [vmem:[%s2068_s4 + $0x30] sm:$0xff] %v1084_v31  ;;  %v1087_v26 = vadd.f32 %v1553_v36, %v1934_v16  ;;  %v1078_v27 = vpop.f32.mrb[35].mxu1 }
 0x37f   :  { %1190 = vst [vmem:[%s2068_s4 + $0x20] sm:$0xff] %v1076_v25  ;;  %v1079_v30 = vadd.f32 %v1078_v27, %v1934_v16 }
 0x380   :  { %1193 = vst [vmem:[%s2068_s4 + $0x38] sm:$0xff] %v1087_v26 }
 0x381   :  { %1191 = vst [vmem:[%s2068_s4 + $0x28] sm:$0xff] %v1079_v30 }
 0x383   :  { %v1556_v32 = vpop.f32.mrb[36].mxu1 }
 0x384   :  { %v1100_v34 = vadd.f32 %v1556_v32, %v1934_v16  ;;  %v1091_v28 = vpop.f32.mrb[37].mxu1 }
 0x385   :  { %v1092_v37 = vadd.f32 %v1091_v28, %v1934_v16  ;;  %v1557_v38 = vpop.f32.mrb[38].mxu1 }
 0x386   :  { %1196 = vst [vmem:[%s2068_s4 + $0x50] sm:$0xff] %v1100_v34  ;;  %v1103_v39 = vadd.f32 %v1557_v38, %v1934_v16  ;;  %v1094_v40 = vpop.f32.mrb[39].mxu1 }
 0x387   :  { %1194 = vst [vmem:[%s2068_s4 + $0x40] sm:$0xff] %v1092_v37  ;;  %v1095_v41 = vadd.f32 %v1094_v40, %v1934_v16 }
 0x388   :  { %1197 = vst [vmem:[%s2068_s4 + $0x58] sm:$0xff] %v1103_v39 }
 0x389   :  { %1195 = vst [vmem:[%s2068_s4 + $0x48] sm:$0xff] %v1095_v41 }
 0x38b   :  { %v1560_v42 = vpop.f32.mrb[40].mxu1 }
 0x38c   :  { %v1116_v43 = vadd.f32 %v1560_v42, %v1934_v16  ;;  %v1107_v44 = vpop.f32.mrb[41].mxu1 }
 0x38d   :  { %v1108_v29 = vadd.f32 %v1107_v44, %v1934_v16  ;;  %v1561_v45 = vpop.f32.mrb[42].mxu1 }
 0x38e   :  { %1200 = vst [vmem:[%s2068_s4 + $0x70] sm:$0xff] %v1116_v43  ;;  %v1119_v46 = vadd.f32 %v1561_v45, %v1934_v16  ;;  %v1110_v47 = vpop.f32.mrb[43].mxu1 }
 0x38f   :  { %1198 = vst [vmem:[%s2068_s4 + $0x60] sm:$0xff] %v1108_v29  ;;  %v1111_v48 = vadd.f32 %v1110_v47, %v1934_v16 }
 0x390   :  { %1201 = vst [vmem:[%s2068_s4 + $0x78] sm:$0xff] %v1119_v46 }
 0x391   :  { %1199 = vst [vmem:[%s2068_s4 + $0x68] sm:$0xff] %v1111_v48 }
 0x393   :  { %v1564_v49 = vpop.f32.mrb[44].mxu1 }
 0x394   :  { %v1132_v50 = vadd.f32 %v1564_v49, %v1934_v16  ;;  %v1123_v51 = vpop.f32.mrb[45].mxu1 }
 0x395   :  { %v1124_v52 = vadd.f32 %v1123_v51, %v1934_v16  ;;  %v1565_v53 = vpop.f32.mrb[46].mxu1 }
 0x396   :  { %1204 = vst [vmem:[%s2068_s4 + $0x90] sm:$0xff] %v1132_v50  ;;  %v1135_v54 = vadd.f32 %v1565_v53, %v1934_v16  ;;  %v1126_v55 = vpop.f32.mrb[47].mxu1 }
 0x397   :  { %1202 = vst [vmem:[%s2068_s4 + $0x80] sm:$0xff] %v1124_v52  ;;  %v1127_v56 = vadd.f32 %v1126_v55, %v1934_v16 }
 0x398   :  { %1205 = vst [vmem:[%s2068_s4 + $0x98] sm:$0xff] %v1135_v54 }
 0x399   :  { %1203 = vst [vmem:[%s2068_s4 + $0x88] sm:$0xff] %v1127_v56 }
 0x39b   :  { %v1568_v57 = vpop.f32.mrb[48].mxu1 }
 0x39c   :  { %v1148_v58 = vadd.f32 %v1568_v57, %v1934_v16  ;;  %v1139_v59 = vpop.f32.mrb[49].mxu1 }
 0x39d   :  { %v1140_v60 = vadd.f32 %v1139_v59, %v1934_v16  ;;  %v1569_v61 = vpop.f32.mrb[50].mxu1 }
 0x39e   :  { %1208 = vst [vmem:[%s2068_s4 + $0xb0] sm:$0xff] %v1148_v58  ;;  %v1151_v62 = vadd.f32 %v1569_v61, %v1934_v16  ;;  %v1142_v63 = vpop.f32.mrb[51].mxu1 }
 0x39f   :  { %1206 = vst [vmem:[%s2068_s4 + $0xa0] sm:$0xff] %v1140_v60  ;;  %v1143_v0 = vadd.f32 %v1142_v63, %v1934_v16 }
 0x3a0   :  { %1209 = vst [vmem:[%s2068_s4 + $0xb8] sm:$0xff] %v1151_v62 }
 0x3a1   :  { %1207 = vst [vmem:[%s2068_s4 + $0xa8] sm:$0xff] %v1143_v0 }
 0x3a3   :  { %v1572_v1 = vpop.f32.mrb[52].mxu1 }
 0x3a4   :  { %v1164_v2 = vadd.f32 %v1572_v1, %v1934_v16  ;;  %v1155_v3 = vpop.f32.mrb[53].mxu1 }
 0x3a5   :  { %v1156_v4 = vadd.f32 %v1155_v3, %v1934_v16  ;;  %v1573_v5 = vpop.f32.mrb[54].mxu1 }
 0x3a6   :  { %1212 = vst [vmem:[%s2068_s4 + $0xd0] sm:$0xff] %v1164_v2  ;;  %v1167_v6 = vadd.f32 %v1573_v5, %v1934_v16  ;;  %v1158_v7 = vpop.f32.mrb[55].mxu1 }
 0x3a7   :  { %1210 = vst [vmem:[%s2068_s4 + $0xc0] sm:$0xff] %v1156_v4  ;;  %v1159_v8 = vadd.f32 %v1158_v7, %v1934_v16 }
 0x3a8   :  { %1213 = vst [vmem:[%s2068_s4 + $0xd8] sm:$0xff] %v1167_v6 }
 0x3a9   :  { %1211 = vst [vmem:[%s2068_s4 + $0xc8] sm:$0xff] %v1159_v8 }
 0x3ab   :  { %v1576_v9 = vpop.f32.mrb[56].mxu1 }
 0x3ac   :  { %v1180_v10 = vadd.f32 %v1576_v9, %v1934_v16  ;;  %v1171_v11 = vpop.f32.mrb[57].mxu1 }
 0x3ad   :  { %v1172_v12 = vadd.f32 %v1171_v11, %v1934_v16  ;;  %v1577_v13 = vpop.f32.mrb[58].mxu1 }
 0x3ae   :  { %1216 = vst [vmem:[%s2068_s4 + $0xf0] sm:$0xff] %v1180_v10  ;;  %v1183_v14 = vadd.f32 %v1577_v13, %v1934_v16  ;;  %v1174_v15 = vpop.f32.mrb[59].mxu1 }
 0x3af   :  { %1214 = vst [vmem:[%s2068_s4 + $0xe0] sm:$0xff] %v1172_v12  ;;  %v1175_v17 = vadd.f32 %v1174_v15, %v1934_v16 }
 0x3b0   :  { %1217 = vst [vmem:[%s2068_s4 + $0xf8] sm:$0xff] %v1183_v14 }
 0x3b1   :  { %1215 = vst [vmem:[%s2068_s4 + $0xe8] sm:$0xff] %v1175_v17 }

</bundles_post_ra>
